<compile_context>
chip_gen: v6e
topology: v6e:2x2x1
jax: 0.10.0
libtpu: 0.0.40
codegen_flags: <defaults>
</compile_context>

<pallas_src>
import functools

import jax
import jax.numpy as jnp
from jax import lax
from jax.experimental import pallas as pl
from jax.experimental.pallas import tpu as pltpu


def _round_up(x, m):
    return (x + m - 1) // m * m


def _vmem_budget_bytes():
    """Per-core VMEM budget for the resident-table fast path (generation aware)."""
    try:
        info = pltpu.get_tpu_info()
        cap = int(getattr(info, "vmem_capacity_bytes", 0) or 0)
        if cap > 0:
            return cap * 3 // 4          # headroom for double-buffered output blocks etc.
    except Exception:
        pass
    return 48 * 1024 * 1024              # conservative: fits under v7x's 64 MiB physical


# ---------------------------------------------------------------------------
# Fast path: VMEM-resident table, one-hot MXU gather (no per-row DMAs).
# ---------------------------------------------------------------------------
def _onehot_gather_kernel(idx_ref, tbl_ref, out_ref, *, vocab_pad):
    """out[t, :] = table[idx[t], :] via a one-hot (TM, vocab) x (vocab, W_pad) matmul.

    idx_ref : VMEM (1, TM, 1) int32    -- this block's flat token ids (column layout).
    tbl_ref : VMEM (vocab_pad, W_pad)  -- whole padded table; constant block index in its
                                          BlockSpec keeps it resident across the grid.
    out_ref : VMEM (TM, W_pad)         -- lane-dense output block.
    """
    ids = idx_ref[0]                                            # (TM, 1) int32
    tm = out_ref.shape[0]
    vocab_iota = lax.broadcasted_iota(jnp.int32, (tm, vocab_pad), 1)
    onehot = (vocab_iota == ids).astype(tbl_ref.dtype)          # (TM, vocab_pad)
    out_ref[...] = jnp.dot(
        onehot, tbl_ref[...], preferred_element_type=jnp.float32
    ).astype(out_ref.dtype)


# ---------------------------------------------------------------------------
# Large-table path: manual DMA gather from the native (vocab, 2, D) table in HBM.
# ---------------------------------------------------------------------------
def _dma_gather_kernel(idx_ref, emb_hbm, out_ref, sem, *, rows_per_block, unroll):
    """Gather `rows_per_block` native-layout (2, D) embedding rows per grid step.

    idx_ref : SMEM (n_pad,) int32          -- scalar-prefetched flat token ids.
    emb_hbm : HBM  (vocab, 2, D)           -- original table, untouched (pl.ANY).
    out_ref : VMEM (rows_per_block, 2, D)  -- output block; DMAs land here directly.
    sem     : scalar DMA semaphore shared by every row copy of this step.
    """
    base = pl.program_id(0) * rows_per_block

    def issue(j, carry):
        row = idx_ref[base + j]
        pltpu.make_async_copy(emb_hbm.at[row], out_ref.at[j], sem).start()
        return carry

    lax.fori_loop(0, rows_per_block, issue, 0, unroll=unroll)

    def drain(j, carry):
        row = idx_ref[base + j]   # same (real) descriptor as the issue loop
        pltpu.make_async_copy(emb_hbm.at[row], out_ref.at[j], sem).wait()
        return carry

    lax.fori_loop(0, rows_per_block, drain, 0, unroll=unroll)


# ---------------------------------------------------------------------------
# Jitted forward implementations (table prep already done outside).
# ---------------------------------------------------------------------------
def _forward_resident(table_pad, indices, *, vocab, two, D, W, W_pad, vocab_pad,
                      vmem_limit_bytes):
    dtype = table_pad.dtype
    idx_flat = indices.reshape(-1).astype(jnp.int32)
    n = idx_flat.shape[0]
    if n == 0:
        return jnp.zeros(indices.shape + (two, D), dtype)
    idx_flat = jnp.clip(idx_flat, 0, vocab - 1)

    TM = min(128, _round_up(n, 8))
    n_pad = _round_up(n, TM)
    if n_pad != n:
        idx_flat = jnp.pad(idx_flat, (0, n_pad - n))      # pad ids = 0 (valid row)
    num_blocks = n_pad // TM
    idx_col = idx_flat.reshape(num_blocks, TM, 1)

    itemsize = jnp.dtype(dtype).itemsize
    cost = pl.CostEstimate(
        flops=2 * n_pad * vocab_pad * W_pad,
        transcendentals=0,
        bytes_accessed=vocab_pad * W_pad * itemsize + n_pad * W_pad * itemsize + n_pad * 4,
    )

    out = pl.pallas_call(
        functools.partial(_onehot_gather_kernel, vocab_pad=vocab_pad),
        out_shape=jax.ShapeDtypeStruct((n_pad, W_pad), dtype),
        grid=(num_blocks,),
        in_specs=[
            pl.BlockSpec((1, TM, 1), lambda i: (i, 0, 0)),
            pl.BlockSpec((vocab_pad, W_pad), lambda i: (0, 0)),   # constant -> resident
        ],
        out_specs=pl.BlockSpec((TM, W_pad), lambda i: (i, 0)),
        compiler_params=pltpu.CompilerParams(
            dimension_semantics=("parallel",),
            vmem_limit_bytes=vmem_limit_bytes,
        ),
        cost_estimate=cost,
    )(idx_col, table_pad)

    return out[:n, :W].reshape(indices.shape + (two, D))


def _forward_dma(embeddings, indices, *, vocab, two, D, rows_per_block=256, unroll=8):
    dtype = embeddings.dtype
    idx_flat = indices.reshape(-1).astype(jnp.int32)
    n = idx_flat.shape[0]
    if n == 0:
        return jnp.zeros(indices.shape + (two, D), dtype)
    idx_flat = jnp.clip(idx_flat, 0, vocab - 1)

    TM = min(rows_per_block, _round_up(n, 8))
    n_pad = _round_up(n, TM)
    if n_pad != n:
        idx_flat = jnp.pad(idx_flat, (0, n_pad - n))      # pad ids = 0 (valid row)
    num_blocks = n_pad // TM

    itemsize = jnp.dtype(dtype).itemsize
    row_bytes = two * D * itemsize
    cost = pl.CostEstimate(
        flops=0,
        transcendentals=0,
        bytes_accessed=2 * n_pad * row_bytes + n_pad * 4,
    )

    grid_spec = pltpu.PrefetchScalarGridSpec(
        num_scalar_prefetch=1,                            # idx_flat -> SMEM
        grid=(num_blocks,),
        in_specs=[pl.BlockSpec(memory_space=pl.ANY)],     # raw HBM table, manual gather
        out_specs=pl.BlockSpec((TM, two, D), lambda i, idx: (i, 0, 0)),
        scratch_shapes=[pltpu.SemaphoreType.DMA(())],
    )

    out = pl.pallas_call(
        functools.partial(_dma_gather_kernel, rows_per_block=TM, unroll=unroll),
        out_shape=jax.ShapeDtypeStruct((n_pad, two, D), dtype),
        grid_spec=grid_spec,
        compiler_params=pltpu.CompilerParams(dimension_semantics=("parallel",)),
        cost_estimate=cost,
    )(idx_flat, embeddings)

    if n_pad != n:
        out = out[:n]
    return out.reshape(indices.shape + (two, D))


# ---------------------------------------------------------------------------
# Module wrapper: table prep + path selection happen once, outside forward's jit.
# ---------------------------------------------------------------------------
class BoxEmbeddings:
    """JAX/Pallas port of the PyTorch BoxEmbeddings module (forward pass only)."""

    def __init__(self, embeddings, path="auto"):
        vocab, two, D = embeddings.shape
        assert two == 2, "box embeddings store (min, max) per token"
        self.embeddings = embeddings
        self.vocab, self.two, self.D = int(vocab), int(two), int(D)

        W = self.two * self.D
        W_pad = max(128, _round_up(W, 128))
        vocab_pad = _round_up(self.vocab, 8)
        itemsize = jnp.dtype(embeddings.dtype).itemsize
        table_bytes = vocab_pad * W_pad * itemsize
        # table + double-buffered lane-dense output blocks (TM<=128) + slack
        fast_need = table_bytes + 4 * 128 * W_pad * itemsize + (4 << 20)
        budget = _vmem_budget_bytes()

        if path == "auto":
            self.use_resident = fast_need <= budget
        elif path == "resident":
            self.use_resident = True
        elif path == "dma":
            self.use_resident = False
        else:
            raise ValueError(f"unknown path {path!r}")

        if self.use_resident:
            # Prep exactly ONCE (flatten + lane/sublane pad); never inside the jit.
            tbl = embeddings.reshape(self.vocab, W)
            tbl = jnp.pad(tbl, ((0, vocab_pad - self.vocab), (0, W_pad - W)))
            self._table = tbl
            self._fwd = jax.jit(functools.partial(
                _forward_resident,
                vocab=self.vocab, two=self.two, D=self.D, W=W, W_pad=W_pad,
                vocab_pad=vocab_pad,
                vmem_limit_bytes=max(int(fast_need), 32 * 1024 * 1024),
            ))
        else:
            # Large table: stays in HBM in native layout, no padded copy at all.
            self._table = embeddings
            self._fwd = jax.jit(functools.partial(
                _forward_dma, vocab=self.vocab, two=self.two, D=self.D))

    def __call__(self, indices):
        return self._fwd(self._table, indices)

    forward = __call__


def init_box_embeddings(key, vocab_size, embedding_dim):
    """Deterministic re-creation of the torch init:
       uniform(1e-7, 0.9 - 1e-7) then embeddings[:, 1, :] = embeddings[:, 0, :] + 0.1
    """
    lo, hi = 1e-7, 0.9 - 1e-7
    emb = jax.random.uniform(
        key, (vocab_size, 2, embedding_dim), dtype=jnp.float32, minval=lo, maxval=hi
    )
    emb = emb.at[:, 1, :].set(emb[:, 0, :] + 0.1)
    return emb


if __name__ == "__main__":
    vocab_size = 64
    embedding_dim = 200   # module default (W = 400 -> padded once to 512 lanes)

    key = jax.random.PRNGKey(0)
    k_emb, k_idx1, k_idx2 = jax.random.split(key, 3)

    embeddings = init_box_embeddings(k_emb, vocab_size, embedding_dim)

    # Auto path: 64x512x4B = 128 KiB table -> VMEM-resident one-hot MXU gather.
    box = BoxEmbeddings(embeddings)
    indices = jax.random.randint(k_idx1, (2, 8), 0, vocab_size, dtype=jnp.int32)
    out = jax.block_until_ready(box(indices))
    ref = embeddings[indices]
    assert out.shape == indices.shape + (2, embedding_dim), out.shape
    assert out.dtype == embeddings.dtype
    assert jnp.allclose(out, ref), "resident-path gather mismatch (small case)"

    # Multi-block + row padding on the resident path (n=210 -> TM=128, 2 grid steps).
    indices2 = jax.random.randint(k_idx2, (3, 70), 0, vocab_size, dtype=jnp.int32)
    out2 = jax.block_until_ready(box(indices2))
    assert out2.shape == indices2.shape + (2, embedding_dim), out2.shape
    assert jnp.allclose(out2, embeddings[indices2]), "resident-path mismatch (multi-block)"

    # Forced DMA-gather path (the large-table code path), native (2, D) row slabs.
    box_dma = BoxEmbeddings(embeddings, path="dma")
    out3 = jax.block_until_ready(box_dma(indices))
    assert jnp.allclose(out3, ref), "DMA-path gather mismatch (small case)"
    out4 = jax.block_until_ready(box_dma(indices2))
    assert jnp.allclose(out4, embeddings[indices2]), "DMA-path mismatch (multi-block)"

    print("KERNEL_OK")
</pallas_src>

<mosaic_0001>
module attributes {stable_mosaic.version = 11 : i64} {
  func.func @_onehot_gather_kernel(%arg0: i32, %arg1: memref<1x16x1xi32, #tpu.memory_space<vmem>>, %arg2: memref<64x512xf32, #tpu.memory_space<vmem>>, %arg3: memref<16x512xf32, #tpu.memory_space<vmem>>) attributes {dimension_semantics = [#tpu.dimension_semantics<parallel>], iteration_bounds = array<i64: 1>, scalar_prefetch = 0 : i64, scratch_operands = 0 : i64, tpu.core_type = #tpu.core_type<tc>, window_params = [{transform_indices = @transform_0, window_bounds = array<i64: 1, 16, 1>}, {pipeline_mode = #tpu.pipeline_mode<synchronous>, transform_indices = @transform_1, window_bounds = array<i64: 64, 512>}, {transform_indices = @transform_2, window_bounds = array<i64: 16, 512>}]} {
    %c0 = arith.constant 0 : index
    %c0_0 = arith.constant 0 : index
    %c0_1 = arith.constant 0 : index
    %0 = vector.load %arg1[%c0, %c0_0, %c0_1] : memref<1x16x1xi32, #tpu.memory_space<vmem>>, vector<1x16x1xi32>
    %1 = vector.shape_cast %0 : vector<1x16x1xi32> to vector<16x1xi32>
    %2 = tpu.iota {dimensions = array<i32: 1>} : vector<16x64xi32>
    %3 = vector.broadcast %1 : vector<16x1xi32> to vector<16x64xi32>
    %4 = arith.cmpi eq, %2, %3 : vector<16x64xi32>
    %5 = arith.extui %4 : vector<16x64xi1> to vector<16x64xi32>
    %6 = arith.sitofp %5 : vector<16x64xi32> to vector<16x64xf32>
    %c0_2 = arith.constant 0 : index
    %c0_3 = arith.constant 0 : index
    %7 = vector.load %arg2[%c0_2, %c0_3] : memref<64x512xf32, #tpu.memory_space<vmem>>, vector<64x512xf32>
    %cst = arith.constant dense<0.000000e+00> : vector<16x512xf32>
    %8 = tpu.matmul %6, %7, %cst {dimension_numbers = #tpu.dot_dimension_numbers<[1], [0], [0], [1], [0, 0, 1, 1], [], []>} : vector<16x64xf32>, vector<64x512xf32>, vector<16x512xf32> -> vector<16x512xf32>
    %c0_4 = arith.constant 0 : index
    %c0_5 = arith.constant 0 : index
    %9 = vector.load %arg3[%c0_4, %c0_5] : memref<16x512xf32, #tpu.memory_space<vmem>>, vector<16x512xf32>
    tpu.vector_store %arg3[%c0_4, %c0_5], %8 {strides = array<i32>} : memref<16x512xf32, #tpu.memory_space<vmem>>, vector<16x512xf32>,
    return
  }
  func.func @transform_0(%arg0: i32) -> (i32, i32, i32) {
    %c0_i32 = arith.constant 0 : i32
    %c0_i32_0 = arith.constant 0 : i32
    %c0_i32_1 = arith.constant 0 : i32
    return %arg0, %c0_i32, %c0_i32_0 : i32, i32, i32
  }
  func.func @transform_1(%arg0: i32) -> (i32, i32) {
    %c0_i32 = arith.constant 0 : i32
    %c0_i32_0 = arith.constant 0 : i32
    %c0_i32_1 = arith.constant 0 : i32
    return %c0_i32, %c0_i32_0 : i32, i32
  }
  func.func @transform_2(%arg0: i32) -> (i32, i32) {
    %c0_i32 = arith.constant 0 : i32
    %c0_i32_0 = arith.constant 0 : i32
    return %arg0, %c0_i32 : i32, i32
  }
}

</mosaic_0001>

<bundles_post_ra>
// kernel: _forward_resident.1
= control target key start
LH: loop header
LB: loop body
LE: loop exit
PB: predicated region body
PF: predicated region fallthrough
CT: control target
= control target key end

     0   :  { %7 = vsyncpa [#allocation3], 0  ;;  %s281_s9 = smov [#allocation2]   ;;  %s340_s0 = inlined_call_operand.vmem [shape: s32[1,16,1], index: 0, kind: input, shape index: {}]   ;;  %s341_s1 = inlined_call_operand.hbm [shape: f32[64,512], index: 1, kind: input, shape index: {}]   ;;  %s342_s2 = inlined_call_operand.vmem [shape: f32[16,512], index: 2, kind: output, shape index: {}]  }
   0x1   :  { %s15_s10 = sshll.u32 %s281_s9, 4  ;;  %s16_s10 = int_to_ptr.vmem [resolvable:$true] %s15_s10 }
   0x2   :  { %s267_s11 = scalar_lea.vmem %s16_s10, 4096  ;;  %p272_p1 = scmp.lt.s32.totalorder %s16_s10, %s16_s10 }
   0x3   :  { %p268_p0 = scmp.ne.s32.totalorder %s16_s10, %s267_s11  ;;  %p273_p2 = scmp.lt.s32.totalorder %s267_s11, %s267_s11 }
   0x5   :  { %p274_p3 = por %p273_p2, %p272_p1 }
   0x7   :  { %p275_p4 = pnand %p274_p3, %p268_p0 }
   0x9   :  { %278 = shalt.err (!%p275_p4)
}
   0xa   :  { %s282_s12 = smov 512   ;;  %s283_s13 = smov 32  }
   0xb   :  { %21 = dma.hbm_to_vmem [thread:$0]  %s341_s1, 4096, %s16_s10, [#allocation3], %s282_s12, %s282_s12, %s283_s13  }
   0xc   :  { %279 = dma.done.wait [#allocation3], 4096  }
   0xd   :  { %280 = vsyncadd [#allocation3], 4294963200  ;;  %v284_v0 = vmov 0   ;;  %v285_v1 = vmov 0.0   ;;  %v25_v2 = vld [vmem:[%s340_s0] sm:$0xff]  ;;  %v26_v3 = vld [vmem:[%s340_s0 + $0x8] sm:$0xff]  ;;  %v27_v36 = vlaneseq }
   0xe   :  { %258 = vset.pattern.permute.xlu0 %v284_v0  ;;  %144 = vmatprep.mubr.f32.mxu0 %v285_v1  ;;  %v70_v4 = vld [vmem:[#allocation2 + $0xe8] sm:$0xff]  ;;  %v72_v5 = vld [vmem:[#allocation2 + $0xf8] sm:$0xff]  ;;  %v69_v6 = vld [vmem:[#allocation2 + $0xe0] sm:$0xff]  ;;  %vm73_vm0 = vcmask 523264  }
   0xf   :  { %221 = vmatprep.mubr.f32.mxu1 %v285_v1  ;;  %30 = vperm.xlu0 %258, %v25_v2   ;;  %v71_v7 = vld [vmem:[#allocation2 + $0xf0] sm:$0xff]  ;;  %v66_v8 = vld [vmem:[#allocation2 + $0xc8] sm:$0xff]  ;;  %v68_v9 = vld [vmem:[#allocation2 + $0xd8] sm:$0xff]  ;;  %v28_v37 = vand.u32 127, %v27_v36 }
  0x10   :  { %96 = vmatprep.subr.mxu0 %v70_v4  ;;  %173 = vmatprep.subr.mxu1 %v72_v5  ;;  %v65_v10 = vld [vmem:[#allocation2 + $0xc0] sm:$0xff]  ;;  %v67_v11 = vld [vmem:[#allocation2 + $0xd0] sm:$0xff]  ;;  %v62_v12 = vld [vmem:[#allocation2 + $0xa8] sm:$0xff] }
  0x11   :  { %97 = vmatpush1.msra.mxu0 %v69_v6  ;;  %174 = vmatpush1.msra.mxu1 %v71_v7  ;;  %v64_v13 = vld [vmem:[#allocation2 + $0xb8] sm:$0xff]  ;;  %v61_v14 = vld [vmem:[#allocation2 + $0xa0] sm:$0xff]  ;;  %v63_v15 = vld [vmem:[#allocation2 + $0xb0] sm:$0xff] }
  0x12   :  { %98 = vmatprep.subr.mxu0 %v66_v8  ;;  %175 = vmatprep.subr.mxu1 %v68_v9  ;;  %v58_v16 = vld [vmem:[#allocation2 + $0x88] sm:$0xff]  ;;  %v60_v17 = vld [vmem:[#allocation2 + $0x98] sm:$0xff]  ;;  %v57_v18 = vld [vmem:[#allocation2 + $0x80] sm:$0xff] }
  0x13   :  { %99 = vmatpush1.msra.mxu0 %v65_v10  ;;  %33 = vperm.xlu0 %258, %v26_v3   ;;  %v59_v19 = vld [vmem:[#allocation2 + $0x90] sm:$0xff]  ;;  %v54_v20 = vld [vmem:[#allocation2 + $0x68] sm:$0xff]  ;;  %v56_v21 = vld [vmem:[#allocation2 + $0x78] sm:$0xff] }
  0x14   :  { %176 = vmatpush1.msra.mxu1 %v67_v11  ;;  %100 = vmatprep.subr.mxu0 %v62_v12  ;;  %v53_v22 = vld [vmem:[#allocation2 + $0x60] sm:$0xff]  ;;  %v55_v23 = vld [vmem:[#allocation2 + $0x70] sm:$0xff]  ;;  %v50_v24 = vld [vmem:[#allocation2 + $0x48] sm:$0xff] }
  0x15   :  { %177 = vmatprep.subr.mxu1 %v64_v13  ;;  %101 = vmatpush1.msra.mxu0 %v61_v14  ;;  %v52_v25 = vld [vmem:[#allocation2 + $0x58] sm:$0xff]  ;;  %v49_v26 = vld [vmem:[#allocation2 + $0x40] sm:$0xff]  ;;  %v51_v27 = vld [vmem:[#allocation2 + $0x50] sm:$0xff] }
  0x16   :  { %178 = vmatpush1.msra.mxu1 %v63_v15  ;;  %102 = vmatprep.subr.mxu0 %v58_v16  ;;  %v46_v28 = vld [vmem:[#allocation2 + $0x28] sm:$0xff]  ;;  %v48_v29 = vld [vmem:[#allocation2 + $0x38] sm:$0xff]  ;;  %v45_v30 = vld [vmem:[#allocation2 + $0x20] sm:$0xff] }
  0x17   :  { %179 = vmatprep.subr.mxu1 %v60_v17  ;;  %103 = vmatpush1.msra.mxu0 %v57_v18  ;;  %v47_v31 = vld [vmem:[#allocation2 + $0x30] sm:$0xff]  ;;  %v42_v32 = vld [vmem:[#allocation2 + $0x8] sm:$0xff]  ;;  %v44_v33 = vld [vmem:[#allocation2 + $0x18] sm:$0xff] }
  0x18   :  { %180 = vmatpush1.msra.mxu1 %v59_v19  ;;  %104 = vmatprep.subr.mxu0 %v54_v20  ;;  %v41_v34 = vld [vmem:[#allocation2] sm:$0xff]  ;;  %v43_v35 = vld [vmem:[#allocation2 + $0x10] sm:$0xff] }
  0x19   :  { %181 = vmatprep.subr.mxu1 %v56_v21  ;;  %105 = vmatpush1.msra.mxu0 %v53_v22 }
  0x1a   :  { %182 = vmatpush1.msra.mxu1 %v55_v23  ;;  %106 = vmatprep.subr.mxu0 %v50_v24 }
  0x1b   :  { %183 = vmatprep.subr.mxu1 %v52_v25  ;;  %107 = vmatpush1.msra.mxu0 %v49_v26 }
  0x1c   :  { %184 = vmatpush1.msra.mxu1 %v51_v27  ;;  %108 = vmatprep.subr.mxu0 %v46_v28 }
  0x1d   :  { %185 = vmatprep.subr.mxu1 %v48_v29  ;;  %109 = vmatpush1.msra.mxu0 %v45_v30 }
  0x1e   :  { %186 = vmatpush1.msra.mxu1 %v47_v31  ;;  %110 = vmatprep.subr.mxu0 %v42_v32 }
  0x1f   :  { %187 = vmatprep.subr.mxu1 %v44_v33  ;;  %111 = vmatpush1.msra.mxu0 %v41_v34 }
  0x20   :  { %188 = vmatpush1.msra.mxu1 %v43_v35 }
  0x8a   :  { %v31_v38 = vpop.permute.xlu0 %30 }
  0x8b   :  { %vm35_vm1 = vcmp.eq.s32.totalorder %v28_v37, %v31_v38 }
  0x8c   :  { %v247_v39 = vsel %vm35_vm1, 1.0, %v285_v1 }
  0x8d   :  { %249 = vmatmul.mubr.msk.f32.vlgmr.msra.gmra.mxu0 %vm73_vm0, %v247_v39  ;;  %251 = vmatmul.mubr.msk.f32.vlgmr.msra.gmra.mxu1 %vm73_vm0, %v247_v39 }
  0x8e   :  { %v34_v40 = vpop.permute.xlu0 %33  ;;  %150 = vmatprep.mubr.f32.mxu0 %v285_v1  ;;  %227 = vmatprep.mubr.f32.mxu1 %v285_v1 }
  0x8f   :  { %vm36_vm2 = vcmp.eq.s32.totalorder %v28_v37, %v34_v40 }
  0x90   :  { %v248_v41 = vsel %vm36_vm2, 1.0, %v285_v1 }
  0x91   :  { %250 = vmatmul.mubr.msk.f32.gmra.mxu0 %vm73_vm0, %v248_v41  ;;  %252 = vmatmul.mubr.msk.f32.gmra.mxu1 %vm73_vm0, %v248_v41 }
 0x14d   :  { %v146_v42 = vpop.f32.mrf.mxu0  ;;  %v223_v43 = vpop.f32.mrf.mxu1 }
 0x14e   :  { %234 = vst [vmem:[%s342_s2] sm:$0xff] %v146_v42  ;;  %236 = vst [vmem:[%s342_s2 + $0x10] sm:$0xff] %v223_v43 }
 0x14f   :  { %v148_v44 = vpop.f32.mrf.mxu0  ;;  %v225_v45 = vpop.f32.mrf.mxu1 }
 0x150   :  { %235 = vst [vmem:[%s342_s2 + $0x8] sm:$0xff] %v148_v44  ;;  %237 = vst [vmem:[%s342_s2 + $0x18] sm:$0xff] %v225_v45 }
 0x151   :  { %v152_v46 = vpop.f32.mrf.mxu0  ;;  %v229_v47 = vpop.f32.mrf.mxu1 }
 0x152   :  { %238 = vst [vmem:[%s342_s2 + $0x20] sm:$0xff] %v152_v46  ;;  %240 = vst [vmem:[%s342_s2 + $0x30] sm:$0xff] %v229_v47 }
 0x153   :  { %v154_v48 = vpop.f32.mrf.mxu0  ;;  %v231_v49 = vpop.f32.mrf.mxu1 }
 0x154   :  { %239 = vst [vmem:[%s342_s2 + $0x28] sm:$0xff] %v154_v48  ;;  %241 = vst [vmem:[%s342_s2 + $0x38] sm:$0xff] %v231_v49 }
 0x155   :  { %246 = vsyncpa [#allocation3], 1 }

</bundles_post_ra>
